<compile_context>
chip_gen: v7x
topology: tpu7x:2x2x1
jax: 0.10.0
libtpu: 0.0.40
codegen_flags: <defaults>
</compile_context>

<pallas_src>
import functools

import numpy as np
import jax
import jax.numpy as jnp
from jax import lax
from jax.experimental import pallas as pl
from jax.experimental.pallas import tpu as pltpu


def _round_up(x, m):
    return (x + m - 1) // m * m


# ---------------------------------------------------------------------------
# Fused Pallas kernel: conv1 -> relu -> conv2 -> relu -> fc -> (mean | varlog)
# Every layer is a matmul against pre-laid-out weights; intermediates stay
# on-chip.  Dots accumulate in f32; elementwise (bias, relu) stays in f32.
# ---------------------------------------------------------------------------
def _encoder_fused_kernel(x_ref, w1_ref, b1_ref, w2_ref, b2_ref,
                          wfc_ref, bfc_ref, wh_ref, bh_ref, out_ref):
    cdt = w1_ref.dtype                       # MXU operand dtype (f32 or bf16)
    x = x_ref[...].astype(cdt)

    # conv1 as GEMM + bias + ReLU:  [bm, H*W*Cin] @ [H*W*Cin, Ho1*Wo1*F1]
    h = jnp.dot(x, w1_ref[...], preferred_element_type=jnp.float32)
    h = jnp.maximum(h + b1_ref[...], 0.0)

    # conv2 as GEMM + bias + ReLU:  [bm, N1] @ [N1, Ho2*Wo2*F2]
    h = jnp.dot(h.astype(cdt), w2_ref[...], preferred_element_type=jnp.float32)
    h = jnp.maximum(h + b2_ref[...], 0.0)

    # fc (NCHW flatten order already folded into the weight permutation)
    h = jnp.dot(h.astype(cdt), wfc_ref[...], preferred_element_type=jnp.float32)
    h = h + bfc_ref[...]

    # fused mean/varlog heads (concatenated, zero-padded to lane-dense N)
    o = jnp.dot(h.astype(cdt), wh_ref[...], preferred_element_type=jnp.float32)
    out_ref[...] = (o + bh_ref[...]).astype(out_ref.dtype)


# ---------------------------------------------------------------------------
# Trace-time weight preparation (pure layout plumbing, no hot-path work)
# ---------------------------------------------------------------------------
def _conv_as_dense_matrix(weight_oihw, H, W, stride, pad):
    """Dense 'unfolded' conv matrix Wf: [H*W*Cin, Ho*Wo*Cout].

    Input features ordered (h, w, ci); output features ordered (ho, wo, co)
    (channels-last on both sides, so conv layers chain without transposes).
    """
    Cout, Cin, k, _ = weight_oihw.shape
    Ho = (H + 2 * pad - k) // stride + 1
    Wo = (W + 2 * pad - k) // stride + 1

    # Static binary gather tensor (built once at trace time with numpy).
    G = np.zeros((H * W, Ho * Wo, k * k), dtype=np.float32)
    for ho in range(Ho):
        for wo in range(Wo):
            for kh in range(k):
                for kw in range(k):
                    h = stride * ho + kh - pad
                    w = stride * wo + kw - pad
                    if 0 <= h < H and 0 <= w < W:
                        G[h * W + w, ho * Wo + wo, kh * k + kw] = 1.0
    G = jnp.asarray(G)                                            # [H*W, P, k*k]

    wk = jnp.transpose(weight_oihw, (2, 3, 1, 0)).reshape(k * k, Cin, Cout)
    Wf = jnp.einsum("xpk,kio->xipo", G, wk)                       # [H*W, Cin, P, Cout]
    return Wf.reshape(H * W * Cin, Ho * Wo * Cout), Ho, Wo


def _prepare_operands(params, H, W, compute_dtype):
    F2 = params["conv2_w"].shape[0]
    L = params["mean_w"].shape[0]
    Ff = params["fc_w"].shape[0]

    w1, H1, W1 = _conv_as_dense_matrix(params["conv1_w"], H, W, stride=2, pad=1)
    b1 = jnp.tile(params["conv1_b"], H1 * W1).reshape(1, -1)

    w2, H2, W2 = _conv_as_dense_matrix(params["conv2_w"], H1, W1, stride=2, pad=1)
    b2 = jnp.tile(params["conv2_b"], H2 * W2).reshape(1, -1)

    # torch flattens NCHW (c, h, w); our activations are (h, w, c) -> permute
    # fc weight columns once at trace time (zero runtime cost).
    wfc = (params["fc_w"].reshape(Ff, F2, H2, W2)
           .transpose(0, 2, 3, 1).reshape(Ff, -1).T)              # [H2*W2*F2, Ff]
    bfc = params["fc_b"].reshape(1, Ff)

    # concat mean & varlog heads; pad output lanes to a multiple of 128.
    wh = jnp.concatenate([params["mean_w"].T, params["var_w"].T], axis=1)  # [Ff, 2L]
    bh = jnp.concatenate([params["mean_b"], params["var_b"]])              # [2L]
    NH = _round_up(2 * L, 128)
    wh = jnp.pad(wh, ((0, 0), (0, NH - 2 * L)))
    bh = jnp.pad(bh, (0, NH - 2 * L)).reshape(1, NH)

    cdt = compute_dtype
    f32 = jnp.float32
    return (w1.astype(cdt), b1.astype(f32),
            w2.astype(cdt), b2.astype(f32),
            wfc.astype(cdt), bfc.astype(f32),
            wh.astype(cdt), bh.astype(f32)), L


# ---------------------------------------------------------------------------
# Encoder forward (single fused Pallas call)
# ---------------------------------------------------------------------------
def encoder_forward(params, x, compute_dtype=jnp.float32):
    B, Cin, H, W = x.shape
    (w1, b1, w2, b2, wfc, bfc, wh, bh), L = _prepare_operands(
        params, H, W, compute_dtype)

    # Flatten each image channels-last (h, w, ci) to match the dense conv mats.
    x2d = x.transpose(0, 2, 3, 1).reshape(B, H * W * Cin).astype(jnp.float32)

    K1 = x2d.shape[1]
    N1, N2, Ff, NH = w1.shape[1], w2.shape[1], wfc.shape[1], wh.shape[1]

    # Batch-row tiling: grid axis is "parallel" (splits across v7x's 2 TCs).
    bm = 128 if B >= 128 else _round_up(B, 8)
    M = _round_up(B, bm)
    if M > B:
        x2d = jnp.pad(x2d, ((0, M - B), (0, 0)))

    def _whole(a):
        return pl.BlockSpec(a.shape, lambda i: (0, 0))

    flops = 2 * M * (K1 * N1 + N1 * N2 + N2 * Ff + Ff * NH)
    nbytes = (sum(int(a.size) * a.dtype.itemsize
                  for a in (x2d, w1, b1, w2, b2, wfc, bfc, wh, bh))
              + M * NH * 4)

    out = pl.pallas_call(
        _encoder_fused_kernel,
        out_shape=jax.ShapeDtypeStruct((M, NH), jnp.float32),
        grid=(M // bm,),
        in_specs=[pl.BlockSpec((bm, K1), lambda i: (i, 0)),
                  _whole(w1), _whole(b1),
                  _whole(w2), _whole(b2),
                  _whole(wfc), _whole(bfc),
                  _whole(wh), _whole(bh)],
        out_specs=pl.BlockSpec((bm, NH), lambda i: (i, 0)),
        compiler_params=pltpu.CompilerParams(
            dimension_semantics=("parallel",)),
        cost_estimate=pl.CostEstimate(flops=flops, transcendentals=0,
                                      bytes_accessed=nbytes),
    )(x2d, w1, b1, w2, b2, wfc, bfc, wh, bh)

    return out[:B, :L], out[:B, L:2 * L]


# ---------------------------------------------------------------------------
# Pure-JAX reference (for correctness check)
# ---------------------------------------------------------------------------
def encoder_reference(params, x):
    def conv(x, w, b):
        y = lax.conv_general_dilated(
            x, w, window_strides=(2, 2), padding=((1, 1), (1, 1)),
            dimension_numbers=("NCHW", "OIHW", "NCHW"),
            precision=lax.Precision.HIGHEST)
        return jax.nn.relu(y + b.reshape(1, -1, 1, 1))

    h = conv(x, params["conv1_w"], params["conv1_b"])
    h = conv(h, params["conv2_w"], params["conv2_b"])
    h = h.reshape(h.shape[0], -1)
    hp = lax.Precision.HIGHEST
    h = jnp.dot(h, params["fc_w"].T, precision=hp) + params["fc_b"]
    mean = jnp.dot(h, params["mean_w"].T, precision=hp) + params["mean_b"]
    varlog = jnp.dot(h, params["var_w"].T, precision=hp) + params["var_b"]
    return mean, varlog


# ---------------------------------------------------------------------------
# Deterministic parameter construction (shapes follow the PyTorch __init__)
# ---------------------------------------------------------------------------
def make_params(key, filters, kernel_size, latent_dim, image_size):
    keys = jax.random.split(key, 10)
    flat_feats = 2 * filters * (image_size // 4) ** 2

    def init(k, shape, scale=0.1):
        return scale * jax.random.normal(k, shape, dtype=jnp.float32)

    return {
        "conv1_w": init(keys[0], (filters, 1, kernel_size, kernel_size)),
        "conv1_b": init(keys[1], (filters,)),
        "conv2_w": init(keys[2], (2 * filters, filters, kernel_size, kernel_size)),
        "conv2_b": init(keys[3], (2 * filters,)),
        "fc_w":    init(keys[4], (filters, flat_feats)),
        "fc_b":    init(keys[5], (filters,)),
        "mean_w":  init(keys[6], (latent_dim, filters)),
        "mean_b":  init(keys[7], (latent_dim,)),
        "var_w":   init(keys[8], (latent_dim, filters)),
        "var_b":   init(keys[9], (latent_dim,)),
    }


if __name__ == "__main__":
    filters, kernel_size, latent_dim, image_size = 4, 3, 8, 16
    batch = 2

    key = jax.random.PRNGKey(0)
    pkey, xkey = jax.random.split(key)
    params = make_params(pkey, filters, kernel_size, latent_dim, image_size)
    x = jax.random.normal(xkey, (batch, 1, image_size, image_size),
                          dtype=jnp.float32)

    mean_ref, varlog_ref = encoder_reference(params, x)

    # --- f32 path (default) ---------------------------------------------
    fwd_f32 = jax.jit(encoder_forward)
    mean, varlog = fwd_f32(params, x)
    jax.block_until_ready((mean, varlog))
    assert mean.shape == (batch, latent_dim) and varlog.shape == (batch, latent_dim)
    assert jnp.allclose(mean, mean_ref, atol=2e-3, rtol=2e-3)
    assert jnp.allclose(varlog, varlog_ref, atol=2e-3, rtol=2e-3)

    # --- bf16-in / f32-accumulate path (v6e/v7x MXU-friendly) -------------
    fwd_bf16 = jax.jit(functools.partial(encoder_forward,
                                         compute_dtype=jnp.bfloat16))
    mean_b, varlog_b = fwd_bf16(params, x)
    jax.block_until_ready((mean_b, varlog_b))
    assert jnp.allclose(mean_b, mean_ref, atol=5e-2, rtol=5e-2)
    assert jnp.allclose(varlog_b, varlog_ref, atol=5e-2, rtol=5e-2)

    print("KERNEL_OK")
</pallas_src>

<mosaic_0001>
module attributes {stable_mosaic.version = 11 : i64} {
  func.func @_encoder_fused_kernel(%arg0: i32, %arg1: memref<8x256xf32, #tpu.memory_space<vmem>>, %arg2: memref<256x256xf32, #tpu.memory_space<vmem>>, %arg3: memref<1x256xf32, #tpu.memory_space<vmem>>, %arg4: memref<256x128xf32, #tpu.memory_space<vmem>>, %arg5: memref<1x128xf32, #tpu.memory_space<vmem>>, %arg6: memref<128x4xf32, #tpu.memory_space<vmem>>, %arg7: memref<1x4xf32, #tpu.memory_space<vmem>>, %arg8: memref<4x128xf32, #tpu.memory_space<vmem>>, %arg9: memref<1x128xf32, #tpu.memory_space<vmem>>, %arg10: memref<8x128xf32, #tpu.memory_space<vmem>>) attributes {dimension_semantics = [#tpu.dimension_semantics<parallel>], iteration_bounds = array<i64: 1>, scalar_prefetch = 0 : i64, scratch_operands = 0 : i64, tpu.core_type = #tpu.core_type<tc>, window_params = [{transform_indices = @transform_0, window_bounds = array<i64: 8, 256>}, {pipeline_mode = #tpu.pipeline_mode<synchronous>, transform_indices = @transform_1, window_bounds = array<i64: 256, 256>}, {pipeline_mode = #tpu.pipeline_mode<synchronous>, transform_indices = @transform_2, window_bounds = array<i64: 1, 256>}, {pipeline_mode = #tpu.pipeline_mode<synchronous>, transform_indices = @transform_3, window_bounds = array<i64: 256, 128>}, {pipeline_mode = #tpu.pipeline_mode<synchronous>, transform_indices = @transform_4, window_bounds = array<i64: 1, 128>}, {pipeline_mode = #tpu.pipeline_mode<synchronous>, transform_indices = @transform_5, window_bounds = array<i64: 128, 4>}, {pipeline_mode = #tpu.pipeline_mode<synchronous>, transform_indices = @transform_6, window_bounds = array<i64: 1, 4>}, {pipeline_mode = #tpu.pipeline_mode<synchronous>, transform_indices = @transform_7, window_bounds = array<i64: 4, 128>}, {pipeline_mode = #tpu.pipeline_mode<synchronous>, transform_indices = @transform_8, window_bounds = array<i64: 1, 128>}, {transform_indices = @transform_9, window_bounds = array<i64: 8, 128>}]} {
    %c0 = arith.constant 0 : index
    %c0_0 = arith.constant 0 : index
    %0 = vector.load %arg1[%c0, %c0_0] : memref<8x256xf32, #tpu.memory_space<vmem>>, vector<8x256xf32>
    %c0_1 = arith.constant 0 : index
    %c0_2 = arith.constant 0 : index
    %1 = vector.load %arg2[%c0_1, %c0_2] : memref<256x256xf32, #tpu.memory_space<vmem>>, vector<256x256xf32>
    %cst = arith.constant dense<0.000000e+00> : vector<8x256xf32>
    %2 = tpu.matmul %0, %1, %cst {dimension_numbers = #tpu.dot_dimension_numbers<[1], [0], [0], [1], [0, 0, 1, 1], [], []>} : vector<8x256xf32>, vector<256x256xf32>, vector<8x256xf32> -> vector<8x256xf32>
    %c0_3 = arith.constant 0 : index
    %c0_4 = arith.constant 0 : index
    %3 = vector.load %arg3[%c0_3, %c0_4] : memref<1x256xf32, #tpu.memory_space<vmem>>, vector<1x256xf32>
    %4 = vector.broadcast %3 : vector<1x256xf32> to vector<8x256xf32>
    %5 = arith.addf %2, %4 : vector<8x256xf32>
    %cst_5 = arith.constant 0.000000e+00 : f32
    %6 = vector.broadcast %cst_5 : f32 to vector<8x256xf32>
    %7 = arith.maximumf %5, %6 : vector<8x256xf32>
    %c0_6 = arith.constant 0 : index
    %c0_7 = arith.constant 0 : index
    %8 = vector.load %arg4[%c0_6, %c0_7] : memref<256x128xf32, #tpu.memory_space<vmem>>, vector<256x128xf32>
    %cst_8 = arith.constant dense<0.000000e+00> : vector<8x128xf32>
    %9 = tpu.matmul %7, %8, %cst_8 {dimension_numbers = #tpu.dot_dimension_numbers<[1], [0], [0], [1], [0, 0, 1, 1], [], []>} : vector<8x256xf32>, vector<256x128xf32>, vector<8x128xf32> -> vector<8x128xf32>
    %c0_9 = arith.constant 0 : index
    %c0_10 = arith.constant 0 : index
    %10 = vector.load %arg5[%c0_9, %c0_10] : memref<1x128xf32, #tpu.memory_space<vmem>>, vector<1x128xf32>
    %11 = vector.broadcast %10 : vector<1x128xf32> to vector<8x128xf32>
    %12 = arith.addf %9, %11 : vector<8x128xf32>
    %cst_11 = arith.constant 0.000000e+00 : f32
    %13 = vector.broadcast %cst_11 : f32 to vector<8x128xf32>
    %14 = arith.maximumf %12, %13 : vector<8x128xf32>
    %c0_12 = arith.constant 0 : index
    %c0_13 = arith.constant 0 : index
    %15 = vector.load %arg6[%c0_12, %c0_13] : memref<128x4xf32, #tpu.memory_space<vmem>>, vector<128x4xf32>
    %cst_14 = arith.constant dense<0.000000e+00> : vector<8x4xf32>
    %16 = tpu.matmul %14, %15, %cst_14 {dimension_numbers = #tpu.dot_dimension_numbers<[1], [0], [0], [1], [0, 0, 1, 1], [], []>} : vector<8x128xf32>, vector<128x4xf32>, vector<8x4xf32> -> vector<8x4xf32>
    %c0_15 = arith.constant 0 : index
    %c0_16 = arith.constant 0 : index
    %17 = vector.load %arg7[%c0_15, %c0_16] : memref<1x4xf32, #tpu.memory_space<vmem>>, vector<1x4xf32>
    %18 = vector.broadcast %17 : vector<1x4xf32> to vector<8x4xf32>
    %19 = arith.addf %16, %18 : vector<8x4xf32>
    %c0_17 = arith.constant 0 : index
    %c0_18 = arith.constant 0 : index
    %20 = vector.load %arg8[%c0_17, %c0_18] : memref<4x128xf32, #tpu.memory_space<vmem>>, vector<4x128xf32>
    %cst_19 = arith.constant dense<0.000000e+00> : vector<8x128xf32>
    %21 = tpu.matmul %19, %20, %cst_19 {dimension_numbers = #tpu.dot_dimension_numbers<[1], [0], [0], [1], [0, 0, 1, 1], [], []>} : vector<8x4xf32>, vector<4x128xf32>, vector<8x128xf32> -> vector<8x128xf32>
    %c0_20 = arith.constant 0 : index
    %c0_21 = arith.constant 0 : index
    %22 = vector.load %arg9[%c0_20, %c0_21] : memref<1x128xf32, #tpu.memory_space<vmem>>, vector<1x128xf32>
    %23 = vector.broadcast %22 : vector<1x128xf32> to vector<8x128xf32>
    %24 = arith.addf %21, %23 : vector<8x128xf32>
    %c0_22 = arith.constant 0 : index
    %c0_23 = arith.constant 0 : index
    %25 = vector.load %arg10[%c0_22, %c0_23] : memref<8x128xf32, #tpu.memory_space<vmem>>, vector<8x128xf32>
    tpu.vector_store %arg10[%c0_22, %c0_23], %24 {strides = array<i32>} : memref<8x128xf32, #tpu.memory_space<vmem>>, vector<8x128xf32>,
    return
  }
  func.func @transform_0(%arg0: i32) -> (i32, i32) {
    %c0_i32 = arith.constant 0 : i32
    %c0_i32_0 = arith.constant 0 : i32
    return %arg0, %c0_i32 : i32, i32
  }
  func.func @transform_1(%arg0: i32) -> (i32, i32) {
    %c0_i32 = arith.constant 0 : i32
    %c0_i32_0 = arith.constant 0 : i32
    %c0_i32_1 = arith.constant 0 : i32
    return %c0_i32, %c0_i32_0 : i32, i32
  }
  func.func @transform_2(%arg0: i32) -> (i32, i32) {
    %c0_i32 = arith.constant 0 : i32
    %c0_i32_0 = arith.constant 0 : i32
    %c0_i32_1 = arith.constant 0 : i32
    return %c0_i32, %c0_i32_0 : i32, i32
  }
  func.func @transform_3(%arg0: i32) -> (i32, i32) {
    %c0_i32 = arith.constant 0 : i32
    %c0_i32_0 = arith.constant 0 : i32
    %c0_i32_1 = arith.constant 0 : i32
    return %c0_i32, %c0_i32_0 : i32, i32
  }
  func.func @transform_4(%arg0: i32) -> (i32, i32) {
    %c0_i32 = arith.constant 0 : i32
    %c0_i32_0 = arith.constant 0 : i32
    %c0_i32_1 = arith.constant 0 : i32
    return %c0_i32, %c0_i32_0 : i32, i32
  }
  func.func @transform_5(%arg0: i32) -> (i32, i32) {
    %c0_i32 = arith.constant 0 : i32
    %c0_i32_0 = arith.constant 0 : i32
    %c0_i32_1 = arith.constant 0 : i32
    return %c0_i32, %c0_i32_0 : i32, i32
  }
  func.func @transform_6(%arg0: i32) -> (i32, i32) {
    %c0_i32 = arith.constant 0 : i32
    %c0_i32_0 = arith.constant 0 : i32
    %c0_i32_1 = arith.constant 0 : i32
    return %c0_i32, %c0_i32_0 : i32, i32
  }
  func.func @transform_7(%arg0: i32) -> (i32, i32) {
    %c0_i32 = arith.constant 0 : i32
    %c0_i32_0 = arith.constant 0 : i32
    %c0_i32_1 = arith.constant 0 : i32
    return %c0_i32, %c0_i32_0 : i32, i32
  }
  func.func @transform_8(%arg0: i32) -> (i32, i32) {
    %c0_i32 = arith.constant 0 : i32
    %c0_i32_0 = arith.constant 0 : i32
    %c0_i32_1 = arith.constant 0 : i32
    return %c0_i32, %c0_i32_0 : i32, i32
  }
  func.func @transform_9(%arg0: i32) -> (i32, i32) {
    %c0_i32 = arith.constant 0 : i32
    %c0_i32_0 = arith.constant 0 : i32
    return %arg0, %c0_i32 : i32, i32
  }
}

</mosaic_0001>

<bundles_post_ra>
// kernel: tile.13
= control target key start
LH: loop header
LB: loop body
LE: loop exit
PB: predicated region body
PF: predicated region fallthrough
CT: control target
= control target key end

     0   :  { %s64_s0 = inlined_call_operand.vmem [shape: f32[4], index: 0, kind: input, shape index: {}]   ;;  %s65_s1 = inlined_call_operand.vmem [shape: f32[64,4], index: 1, kind: output, shape index: {}]  }
   0x1   :  { %v4_v0 = vld [vmem:[%s64_s0] ss:$0 sm:$0xff] }
   0x2   :  { %5 = vst [vmem:[%s65_s1] sm:$0xff] %v4_v0  ;;  %20 = vst [vmem:[%s65_s1 + $0x8] sm:$0xff] %v4_v0 }
   0x3   :  { %21 = vst [vmem:[%s65_s1 + $0x10] sm:$0xff] %v4_v0  ;;  %22 = vst [vmem:[%s65_s1 + $0x18] sm:$0xff] %v4_v0 }
   0x4   :  { %23 = vst [vmem:[%s65_s1 + $0x20] sm:$0xff] %v4_v0  ;;  %24 = vst [vmem:[%s65_s1 + $0x28] sm:$0xff] %v4_v0 }
   0x5   :  { %25 = vst [vmem:[%s65_s1 + $0x30] sm:$0xff] %v4_v0  ;;  %26 = vst [vmem:[%s65_s1 + $0x38] sm:$0xff] %v4_v0 }

// kernel: tile.14
= control target key start
LH: loop header
LB: loop body
LE: loop exit
PB: predicated region body
PF: predicated region fallthrough
CT: control target
= control target key end

     0   :  { %vm5_vm0 = vcmask 1041409   ;;  %s425_s14 = smov 124   ;;  %s426_s21 = smov 116   ;;  %vm7_vm1 = vcmask 31744   ;;  %vm17_vm2 = vcmask 1048544   ;;  %vm27_vm3 = vcmask 1015744   ;;  %s696_s0 = inlined_call_operand.vmem [shape: f32[64,4], index: 0, kind: input, shape index: {}]   ;;  %s697_s1 = inlined_call_operand.vmem [shape: f32[1,256], index: 1, kind: output, shape index: {}]  }
   0x1   :  { %v331_v0 = vld [vmem:[%s696_s0 + $0x1f] sm:$0x1]   ;;  %v335_v3 = vld [vmem:[%s696_s0 + $0x1d] sm:$0x1]   ;;  %v333_v6 = vld [vmem:[%s696_s0 + $0x1e] sm:$0x1]  }
   0x2   :  { %v332_v1 = vld [vmem:[%s696_s0 + $0x3e] sm:$0x2]   ;;  %v336_v4 = vld [vmem:[%s696_s0 + $0x3c] sm:$0x2]   ;;  %v334_v7 = vld [vmem:[%s696_s0 + $0x3d] sm:$0x2]  }
   0x3   :  { %v14_v2 = vsel %vm5_vm0, %v332_v1, %v331_v0  ;;  %v34_v5 = vsel %vm5_vm0, %v336_v4, %v335_v3  ;;  %v337_v8 = vld [vmem:[%s696_s0 + $0x1c] sm:$0x1]   ;;  %v24_v9 = vsel %vm5_vm0, %v334_v7, %v333_v6  ;;  %v339_v12 = vld [vmem:[%s696_s0 + $0x1b] sm:$0x1]   ;;  %v341_v14 = vld [vmem:[%s696_s0 + $0x1a] sm:$0x1]  }
   0x4   :  { %15 = vrot.lane.b32.xlu0 %v14_v2, %s425_s14  ;;  %35 = vrot.lane.b32.xlu1 %v34_v5, %s426_s21  ;;  %v338_v10 = vld [vmem:[%s696_s0 + $0x3b] sm:$0x2]   ;;  %v340_v13 = vld [vmem:[%s696_s0 + $0x3a] sm:$0x2]   ;;  %s427_s3 = smov 120   ;;  %s428_s4 = smov 112  }
   0x5   :  { %v44_v11 = vsel %vm5_vm0, %v338_v10, %v337_v8  ;;  %v342_v15 = vld [vmem:[%s696_s0 + $0x39] sm:$0x2]   ;;  %v54_v16 = vsel %vm5_vm0, %v340_v13, %v339_v12  ;;  %v343_v18 = vld [vmem:[%s696_s0 + $0x19] sm:$0x1]   ;;  %v345_v20 = vld [vmem:[%s696_s0 + $0x18] sm:$0x1]  }
   0x6   :  { %v64_v17 = vsel %vm5_vm0, %v342_v15, %v341_v14  ;;  %v344_v19 = vld [vmem:[%s696_s0 + $0x38] sm:$0x2]   ;;  %v346_v21 = vld [vmem:[%s696_s0 + $0x37] sm:$0x2]   ;;  %s429_s13 = smov 108   ;;  %s430_s14 = smov 104  }
   0x7   :  { %v74_v22 = vsel %vm5_vm0, %v344_v19, %v343_v18  ;;  %v84_v23 = vsel %vm5_vm0, %v346_v21, %v345_v20  ;;  %v347_v24 = vld [vmem:[%s696_s0 + $0x17] sm:$0x1]   ;;  %v349_v26 = vld [vmem:[%s696_s0 + $0x16] sm:$0x1]   ;;  %s431_s23 = smov 100   ;;  %s432_s24 = smov 96  }
   0x8   :  { %25 = vrot.lane.b32.xlu0 %v24_v9, %s427_s3  ;;  %45 = vrot.lane.b32.xlu1 %v44_v11, %s428_s4  ;;  %v348_v25 = vld [vmem:[%s696_s0 + $0x36] sm:$0x2]   ;;  %v350_v27 = vld [vmem:[%s696_s0 + $0x35] sm:$0x2]   ;;  %s433_s4 = smov 92   ;;  %s434_s5 = smov 88  }
   0x9   :  { %v94_v28 = vsel %vm5_vm0, %v348_v25, %v347_v24  ;;  %v104_v29 = vsel %vm5_vm0, %v350_v27, %v349_v26  ;;  %v351_v30 = vld [vmem:[%s696_s0 + $0x15] sm:$0x1]   ;;  %v353_v32 = vld [vmem:[%s696_s0 + $0x14] sm:$0x1]   ;;  %v355_v36 = vld [vmem:[%s696_s0 + $0x13] sm:$0x1]  }
   0xa   :  { %v352_v31 = vld [vmem:[%s696_s0 + $0x34] sm:$0x2]   ;;  %v354_v33 = vld [vmem:[%s696_s0 + $0x33] sm:$0x2]   ;;  %v356_v37 = vld [vmem:[%s696_s0 + $0x32] sm:$0x2]  }
   0xb   :  { %v114_v34 = vsel %vm5_vm0, %v352_v31, %v351_v30  ;;  %v124_v35 = vsel %vm5_vm0, %v354_v33, %v353_v32  ;;  %v357_v38 = vld [vmem:[%s696_s0 + $0x12] sm:$0x1]   ;;  %s436_s15 = smov 80   ;;  %v134_v40 = vsel %vm5_vm0, %v356_v37, %v355_v36  ;;  %v359_v42 = vld [vmem:[%s696_s0 + $0x11] sm:$0x1]   ;;  %s438_s29 = smov 72  }
   0xc   :  { %55 = vrot.lane.b32.xlu0 %v54_v16, %s429_s13  ;;  %65 = vrot.lane.b32.xlu1 %v64_v17, %s430_s14  ;;  %v358_v39 = vld [vmem:[%s696_s0 + $0x31] sm:$0x2]   ;;  %s435_s14 = smov 84   ;;  %v360_v43 = vld [vmem:[%s696_s0 + $0x30] sm:$0x2]   ;;  %s439_s9 = smov 68  }
   0xd   :  { %v144_v41 = vsel %vm5_vm0, %v358_v39, %v357_v38  ;;  %v361_v44 = vld [vmem:[%s696_s0 + $0x10] sm:$0x1]   ;;  %v2_v46 = vld [vmem:[%s696_s0] sm:$0x1]   ;;  %v154_v48 = vsel %vm5_vm0, %v360_v43, %v359_v42  ;;  %v363_v51 = vld [vmem:[%s696_s0 + $0xf] sm:$0x1]  }
   0xe   :  { %v362_v45 = vld [vmem:[%s696_s0 + $0x2f] sm:$0x2]   ;;  %v330_v47 = vld [vmem:[%s696_s0 + $0x1f] sm:$0x2]   ;;  %v364_v52 = vld [vmem:[%s696_s0 + $0x2e] sm:$0x2]  }
   0xf   :  { %v6_v49 = vsel %vm5_vm0, %v330_v47, %v2_v46  ;;  %v164_v50 = vsel %vm5_vm0, %v362_v45, %v361_v44  ;;  %v365_v53 = vld [vmem:[%s696_s0 + $0xe] sm:$0x1]   ;;  %s440_s10 = smov 64   ;;  %v174_v55 = vsel %vm5_vm0, %v364_v52, %v363_v51  ;;  %v367_v57 = vld [vmem:[%s696_s0 + $0xd] sm:$0x1]   ;;  %s441_s19 = smov 60  }
  0x10   :  { %75 = vrot.lane.b32.xlu0 %v74_v22, %s431_s23  ;;  %85 = vrot.lane.b32.xlu1 %v84_v23, %s432_s24  ;;  %s437_s24 = smov 76   ;;  %8 = vst.msk [vmem:[#allocation0] ss:$8 sm:$0x3] %vm7_vm1, %v6_v49   ;;  %v366_v54 = vld [vmem:[%s696_s0 + $0x2d] sm:$0x2]  }
  0x11   :  { %v184_v56 = vsel %vm5_vm0, %v366_v54, %v365_v53  ;;  %v368_v58 = vld [vmem:[%s696_s0 + $0x2c] sm:$0x2]   ;;  %v369_v59 = vld [vmem:[%s696_s0 + $0xc] sm:$0x1]   ;;  %s442_s20 = smov 56   ;;  %s444_s30 = smov 48  }
  0x12   :  { %v370_v60 = vld [vmem:[%s696_s0 + $0x2b] sm:$0x2]   ;;  %v194_v61 = vsel %vm5_vm0, %v368_v58, %v367_v57  ;;  %v371_v63 = vld [vmem:[%s696_s0 + $0xb] sm:$0x1]   ;;  %v373_v1 = vld [vmem:[%s696_s0 + $0xa] sm:$0x1]  }
  0x13   :  { %v204_v62 = vsel %vm5_vm0, %v370_v60, %v369_v59  ;;  %v372_v0 = vld [vmem:[%s696_s0 + $0x2a] sm:$0x2]   ;;  %v374_v2 = vld [vmem:[%s696_s0 + $0x29] sm:$0x2]   ;;  %v375_v5 = vld [vmem:[%s696_s0 + $0x9] sm:$0x1]  }
  0x14   :  { %95 = vrot.lane.b32.xlu0 %v94_v28, %s433_s4  ;;  %105 = vrot.lane.b32.xlu1 %v104_v29, %s434_s5  ;;  %v214_v3 = vsel %vm5_vm0, %v372_v0, %v371_v63  ;;  %v224_v4 = vsel %vm5_vm0, %v374_v2, %v373_v1  ;;  %v376_v6 = vld [vmem:[%s696_s0 + $0x28] sm:$0x2]   ;;  %v377_v7 = vld [vmem:[%s696_s0 + $0x8] sm:$0x1]   ;;  %s446_s11 = smov 40   ;;  %s448_s21 = smov 32  }
  0x15   :  { %v378_v8 = vld [vmem:[%s696_s0 + $0x27] sm:$0x2]   ;;  %v234_v9 = vsel %vm5_vm0, %v376_v6, %v375_v5  ;;  %v379_v11 = vld [vmem:[%s696_s0 + $0x7] sm:$0x1]   ;;  %v381_v13 = vld [vmem:[%s696_s0 + $0x6] sm:$0x1]  }
  0x16   :  { %v244_v10 = vsel %vm5_vm0, %v378_v8, %v377_v7  ;;  %v380_v12 = vld [vmem:[%s696_s0 + $0x26] sm:$0x2]   ;;  %v382_v14 = vld [vmem:[%s696_s0 + $0x25] sm:$0x2]   ;;  %v383_v17 = vld [vmem:[%s696_s0 + $0x5] sm:$0x1]  }
  0x17   :  { %v254_v15 = vsel %vm5_vm0, %v380_v12, %v379_v11  ;;  %v264_v16 = vsel %vm5_vm0, %v382_v14, %v381_v13  ;;  %v384_v18 = vld [vmem:[%s696_s0 + $0x24] sm:$0x2]   ;;  %v385_v19 = vld [vmem:[%s696_s0 + $0x4] sm:$0x1]   ;;  %s450_s2 = smov 24   ;;  %s452_s12 = smov 16  }
  0x18   :  { %115 = vrot.lane.b32.xlu0 %v114_v34, %s435_s14  ;;  %125 = vrot.lane.b32.xlu1 %v124_v35, %s436_s15  ;;  %v386_v20 = vld [vmem:[%s696_s0 + $0x23] sm:$0x2]   ;;  %v274_v21 = vsel %vm5_vm0, %v384_v18, %v383_v17  ;;  %v387_v23 = vld [vmem:[%s696_s0 + $0x3] sm:$0x1]   ;;  %s454_s17 = smov 8   ;;  %s455_s18 = smov 4  }
  0x19   :  { %v284_v22 = vsel %vm5_vm0, %v386_v20, %v385_v19  ;;  %v388_v24 = vld [vmem:[%s696_s0 + $0x22] sm:$0x2]   ;;  %v389_v25 = vld [vmem:[%s696_s0 + $0x2] sm:$0x1]   ;;  %v391_v29 = vld [vmem:[%s696_s0 + $0x1] sm:$0x1]  }
  0x1a   :  { %v390_v26 = vld [vmem:[%s696_s0 + $0x21] sm:$0x2]   ;;  %v294_v27 = vsel %vm5_vm0, %v388_v24, %v387_v23  ;;  %v392_v30 = vld [vmem:[%s696_s0 + $0x20] sm:$0x2]   ;;  %s453_s0 = smov 12   ;;  %vm37_vm4 = vcmask 982944  }
  0x1b   :  { %v304_v28 = vsel %vm5_vm0, %v390_v26, %v389_v25  ;;  %v314_v31 = vsel %vm5_vm0, %v392_v30, %v391_v29  ;;  %vm47_vm5 = vcmask 950144   ;;  %vm57_vm6 = vcmask 917344  }
  0x1c   :  { %135 = vrot.lane.b32.xlu0 %v134_v40, %s437_s24  ;;  %145 = vrot.lane.b32.xlu1 %v144_v41, %s438_s29  ;;  %s443_s29 = smov 52   ;;  %vm67_vm7 = vcmask 884544   ;;  %vm77_vm8 = vcmask 851744   ;;  %vm87_vm9 = vcmask 818944   ;;  %vm97_vm10 = vcmask 786144  }
  0x1d   :  { %vm107_vm11 = vcmask 753344   ;;  %vm117_vm12 = vcmask 720544   ;;  %vm127_vm13 = vcmask 687744   ;;  %vm137_vm14 = vcmask 654944  }
  0x1e   :  { %vm147_vm15 = vcmask 622144   ;;  %vm157_vm0 = vcmask 589344   ;;  %vm167_vm1 = vcmask 556544  }
  0x20   :  { %155 = vrot.lane.b32.xlu0 %v154_v48, %s439_s9  ;;  %165 = vrot.lane.b32.xlu1 %v164_v50, %s440_s10  ;;  %s445_s10 = smov 44  }
  0x24   :  { %175 = vrot.lane.b32.xlu0 %v174_v55, %s441_s19  ;;  %185 = vrot.lane.b32.xlu1 %v184_v56, %s442_s20  ;;  %s447_s20 = smov 36  }
  0x28   :  { %195 = vrot.lane.b32.xlu0 %v194_v61, %s443_s29  ;;  %205 = vrot.lane.b32.xlu1 %v204_v62, %s444_s30  ;;  %s449_s30 = smov 28  }
  0x2c   :  { %215 = vrot.lane.b32.xlu0 %v214_v3, %s445_s10  ;;  %225 = vrot.lane.b32.xlu1 %v224_v4, %s446_s11  ;;  %s451_s11 = smov 20  }
  0x30   :  { %235 = vrot.lane.b32.xlu0 %v234_v9, %s447_s20  ;;  %245 = vrot.lane.b32.xlu1 %v244_v10, %s448_s21 }
  0x34   :  { %255 = vrot.lane.b32.xlu0 %v254_v15, %s449_s30  ;;  %265 = vrot.lane.b32.xlu1 %v264_v16, %s450_s2 }
  0x38   :  { %275 = vrot.lane.b32.xlu0 %v274_v21, %s451_s11  ;;  %285 = vrot.lane.b32.xlu1 %v284_v22, %s452_s12 }
  0x3c   :  { %295 = vrot.lane.b32.xlu0 %v294_v27, %s453_s0  ;;  %305 = vrot.lane.b32.xlu1 %v304_v28, %s454_s17 }
  0x40   :  { %315 = vrot.lane.b32.xlu0 %v314_v31, %s455_s18 }
  0x76   :  { %v16_v32 = vpop.permute.xlu0 %15   ;;  %v36_v33 = vpop.permute.xlu1 %35  }
  0x77   :  { %18 = vst.msk [vmem:[#allocation0] ss:$8 sm:$0x3] %vm17_vm2, %v16_v32   ;;  %vm177_vm2 = vcmask 523744  }
  0x7a   :  { %v26_v34 = vpop.permute.xlu0 %25   ;;  %v46_v35 = vpop.permute.xlu1 %45  }
  0x7b   :  { %28 = vst.msk [vmem:[#allocation0] ss:$8 sm:$0x3] %vm27_vm3, %v26_v34   ;;  %vm187_vm3 = vcmask 490944  }
  0x7c   :  { %38 = vst.msk [vmem:[#allocation0] ss:$8 sm:$0x3] %vm37_vm4, %v36_v33   ;;  %vm197_vm4 = vcmask 458144  }
  0x7d   :  { %48 = vst.msk [vmem:[#allocation0] ss:$8 sm:$0x3] %vm47_vm5, %v46_v35   ;;  %vm207_vm5 = vcmask 425344  }
  0x7e   :  { %v56_v36 = vpop.permute.xlu0 %55   ;;  %v66_v37 = vpop.permute.xlu1 %65  }
  0x7f   :  { %58 = vst.msk [vmem:[#allocation0] ss:$8 sm:$0x3] %vm57_vm6, %v56_v36   ;;  %vm217_vm6 = vcmask 392544  }
  0x80   :  { %68 = vst.msk [vmem:[#allocation0] ss:$8 sm:$0x3] %vm67_vm7, %v66_v37   ;;  %vm227_vm7 = vcmask 359744  }
  0x82   :  { %v76_v38 = vpop.permute.xlu0 %75   ;;  %v86_v39 = vpop.permute.xlu1 %85  }
  0x83   :  { %78 = vst.msk [vmem:[#allocation0] ss:$8 sm:$0x3] %vm77_vm8, %v76_v38   ;;  %vm237_vm8 = vcmask 326944  }
  0x84   :  { %88 = vst.msk [vmem:[#allocation0] ss:$8 sm:$0x3] %vm87_vm9, %v86_v39   ;;  %vm247_vm9 = vcmask 294144  }
  0x86   :  { %v96_v40 = vpop.permute.xlu0 %95   ;;  %v106_v41 = vpop.permute.xlu1 %105  }
  0x87   :  { %98 = vst.msk [vmem:[#allocation0] ss:$8 sm:$0x3] %vm97_vm10, %v96_v40   ;;  %vm257_vm10 = vcmask 261344  }
  0x88   :  { %108 = vst.msk [vmem:[#allocation0] ss:$8 sm:$0x3] %vm107_vm11, %v106_v41   ;;  %vm267_vm11 = vcmask 228544  }
  0x8a   :  { %v116_v42 = vpop.permute.xlu0 %115   ;;  %v126_v43 = vpop.permute.xlu1 %125  }
  0x8b   :  { %118 = vst.msk [vmem:[#allocation0] ss:$8 sm:$0x3] %vm117_vm12, %v116_v42   ;;  %vm277_vm12 = vcmask 195744  }
  0x8c   :  { %128 = vst.msk [vmem:[#allocation0] ss:$8 sm:$0x3] %vm127_vm13, %v126_v43   ;;  %vm287_vm13 = vcmask 162944  }
  0x8e   :  { %v136_v44 = vpop.permute.xlu0 %135   ;;  %v146_v45 = vpop.permute.xlu1 %145  }
  0x8f   :  { %138 = vst.msk [vmem:[#allocation0] ss:$8 sm:$0x3] %vm137_vm14, %v136_v44   ;;  %vm297_vm14 = vcmask 130144  }
  0x90   :  { %148 = vst.msk [vmem:[#allocation0] ss:$8 sm:$0x3] %vm147_vm15, %v146_v45   ;;  %vm307_vm15 = vcmask 97344  }
  0x92   :  { %v156_v46 = vpop.permute.xlu0 %155   ;;  %v166_v47 = vpop.permute.xlu1 %165  }
  0x93   :  { %158 = vst.msk [vmem:[#allocation0] ss:$8 sm:$0x3] %vm157_vm0, %v156_v46   ;;  %vm317_vm0 = vcmask 64544  }
  0x94   :  { %168 = vst.msk [vmem:[#allocation0] ss:$8 sm:$0x3] %vm167_vm1, %v166_v47  }
  0x96   :  { %v176_v48 = vpop.permute.xlu0 %175   ;;  %v186_v49 = vpop.permute.xlu1 %185  }
  0x97   :  { %178 = vst.msk [vmem:[#allocation0] ss:$8 sm:$0x3] %vm177_vm2, %v176_v48  }
  0x98   :  { %188 = vst.msk [vmem:[#allocation0] ss:$8 sm:$0x3] %vm187_vm3, %v186_v49  }
  0x9a   :  { %v196_v50 = vpop.permute.xlu0 %195   ;;  %v206_v51 = vpop.permute.xlu1 %205  }
  0x9b   :  { %198 = vst.msk [vmem:[#allocation0] ss:$8 sm:$0x3] %vm197_vm4, %v196_v50  }
  0x9c   :  { %208 = vst.msk [vmem:[#allocation0] ss:$8 sm:$0x3] %vm207_vm5, %v206_v51  }
  0x9e   :  { %v216_v52 = vpop.permute.xlu0 %215   ;;  %v226_v53 = vpop.permute.xlu1 %225  }
  0x9f   :  { %218 = vst.msk [vmem:[#allocation0] ss:$8 sm:$0x3] %vm217_vm6, %v216_v52  }
  0xa0   :  { %228 = vst.msk [vmem:[#allocation0] ss:$8 sm:$0x3] %vm227_vm7, %v226_v53  }
  0xa2   :  { %v236_v54 = vpop.permute.xlu0 %235   ;;  %v246_v55 = vpop.permute.xlu1 %245  }
  0xa3   :  { %238 = vst.msk [vmem:[#allocation0] ss:$8 sm:$0x3] %vm237_vm8, %v236_v54  }
  0xa4   :  { %248 = vst.msk [vmem:[#allocation0] ss:$8 sm:$0x3] %vm247_vm9, %v246_v55  }
  0xa6   :  { %v256_v56 = vpop.permute.xlu0 %255   ;;  %v266_v57 = vpop.permute.xlu1 %265  }
  0xa7   :  { %258 = vst.msk [vmem:[#allocation0] ss:$8 sm:$0x3] %vm257_vm10, %v256_v56  }
  0xa8   :  { %268 = vst.msk [vmem:[#allocation0] ss:$8 sm:$0x3] %vm267_vm11, %v266_v57  }
  0xaa   :  { %v276_v58 = vpop.permute.xlu0 %275   ;;  %v286_v59 = vpop.permute.xlu1 %285  }
  0xab   :  { %278 = vst.msk [vmem:[#allocation0] ss:$8 sm:$0x3] %vm277_vm12, %v276_v58  }
  0xac   :  { %288 = vst.msk [vmem:[#allocation0] ss:$8 sm:$0x3] %vm287_vm13, %v286_v59  }
  0xae   :  { %v296_v60 = vpop.permute.xlu0 %295   ;;  %v306_v61 = vpop.permute.xlu1 %305  }
  0xaf   :  { %298 = vst.msk [vmem:[#allocation0] ss:$8 sm:$0x3] %vm297_vm14, %v296_v60  }
  0xb0   :  { %308 = vst.msk [vmem:[#allocation0] ss:$8 sm:$0x3] %vm307_vm15, %v306_v61  }
  0xb2   :  { %v316_v62 = vpop.permute.xlu0 %315  }
  0xb3   :  { %318 = vst.msk [vmem:[#allocation0] ss:$8 sm:$0x3] %vm317_vm0, %v316_v62  }
  0xba   :  { %v322_v63 = vld [vmem:[#allocation0] sm:$0x1]  ;;  %v326_v0 = vld [vmem:[#allocation0 + $0x8] sm:$0x1] }
  0xbb   :  { %324 = vst [vmem:[%s697_s1] sm:$0x1] %v322_v63  ;;  %393 = vst [vmem:[%s697_s1 + $0x1] sm:$0x1] %v326_v0 }

// kernel: tile.18
= control target key start
LH: loop header
LB: loop body
LE: loop exit
PB: predicated region body
PF: predicated region fallthrough
CT: control target
= control target key end

     0   :  { %s28_s0 = inlined_call_operand.vmem [shape: f32[8], index: 0, kind: input, shape index: {}]   ;;  %s29_s1 = inlined_call_operand.vmem [shape: f32[16,8], index: 1, kind: output, shape index: {}]  }
   0x1   :  { %v4_v0 = vld [vmem:[%s28_s0] ss:$0 sm:$0xff] }
   0x2   :  { %5 = vst [vmem:[%s29_s1] sm:$0xff] %v4_v0  ;;  %8 = vst [vmem:[%s29_s1 + $0x8] sm:$0xff] %v4_v0 }

// kernel: tile.19
= control target key start
LH: loop header
LB: loop body
LE: loop exit
PB: predicated region body
PF: predicated region fallthrough
CT: control target
= control target key end

     0   :  { %s131_s10 = smov 120   ;;  %s132_s11 = smov 104   ;;  %vm3_vm0 = vcmask 64512   ;;  %vm9_vm1 = vcmask 1048512   ;;  %vm15_vm2 = vcmask 982912   ;;  %vm21_vm3 = vcmask 917312   ;;  %s207_s0 = inlined_call_operand.vmem [shape: f32[16,8], index: 0, kind: input, shape index: {}]   ;;  %s208_s1 = inlined_call_operand.vmem [shape: f32[1,128], index: 1, kind: output, shape index: {}]  }
   0x1   :  { %v101_v0 = vld [vmem:[%s207_s0 + $0xf] sm:$0x1]   ;;  %v103_v1 = vld [vmem:[%s207_s0 + $0xd] sm:$0x1]   ;;  %v102_v2 = vld [vmem:[%s207_s0 + $0xe] sm:$0x1]  }
   0x2   :  { %7 = vrot.lane.b32.xlu0 %v101_v0, %s131_s10  ;;  %19 = vrot.lane.b32.xlu1 %v103_v1, %s132_s11  ;;  %v104_v3 = vld [vmem:[%s207_s0 + $0xc] sm:$0x1]   ;;  %s133_s16 = smov 112   ;;  %s134_s17 = smov 96   ;;  %v105_v4 = vld [vmem:[%s207_s0 + $0xb] sm:$0x1]  }
   0x3   :  { %v106_v5 = vld [vmem:[%s207_s0 + $0xa] sm:$0x1]   ;;  %v2_v6 = vld [vmem:[%s207_s0] sm:$0x1]   ;;  %s135_s24 = smov 88   ;;  %s136_s25 = smov 80  }
   0x4   :  { %4 = vst.msk [vmem:[#allocation0] sm:$0x1] %vm3_vm0, %v2_v6   ;;  %v107_v7 = vld [vmem:[%s207_s0 + $0x9] sm:$0x1]   ;;  %v108_v8 = vld [vmem:[%s207_s0 + $0x8] sm:$0x1]  }
   0x5   :  { %s137_s30 = smov 72   ;;  %s138_s2 = smov 64   ;;  %v109_v9 = vld [vmem:[%s207_s0 + $0x7] sm:$0x1]   ;;  %v110_v10 = vld [vmem:[%s207_s0 + $0x6] sm:$0x1]  }
   0x6   :  { %13 = vrot.lane.b32.xlu0 %v102_v2, %s133_s16  ;;  %25 = vrot.lane.b32.xlu1 %v104_v3, %s134_s17  ;;  %s139_s7 = smov 56   ;;  %s140_s8 = smov 48   ;;  %v111_v11 = vld [vmem:[%s207_s0 + $0x5] sm:$0x1]   ;;  %v112_v12 = vld [vmem:[%s207_s0 + $0x4] sm:$0x1]  }
   0x7   :  { %s141_s13 = smov 40   ;;  %s142_s14 = smov 32   ;;  %v113_v13 = vld [vmem:[%s207_s0 + $0x3] sm:$0x1]   ;;  %v114_v14 = vld [vmem:[%s207_s0 + $0x2] sm:$0x1]  }
   0x8   :  { %s143_s19 = smov 24   ;;  %s144_s20 = smov 16   ;;  %v115_v15 = vld [vmem:[%s207_s0 + $0x1] sm:$0x1]   ;;  %vm27_vm4 = vcmask 851712   ;;  %vm33_vm5 = vcmask 786112  }
   0x9   :  { %s145_s0 = smov 8   ;;  %vm39_vm6 = vcmask 720512   ;;  %vm45_vm7 = vcmask 654912   ;;  %vm51_vm8 = vcmask 589312   ;;  %vm57_vm9 = vcmask 523712  }
   0xa   :  { %31 = vrot.lane.b32.xlu0 %v105_v4, %s135_s24  ;;  %37 = vrot.lane.b32.xlu1 %v106_v5, %s136_s25  ;;  %vm63_vm10 = vcmask 458112   ;;  %vm69_vm11 = vcmask 392512   ;;  %vm75_vm12 = vcmask 326912   ;;  %vm81_vm13 = vcmask 261312  }
   0xb   :  { %vm87_vm14 = vcmask 195712   ;;  %vm93_vm15 = vcmask 130112  }
   0xe   :  { %43 = vrot.lane.b32.xlu0 %v107_v7, %s137_s30  ;;  %49 = vrot.lane.b32.xlu1 %v108_v8, %s138_s2 }
  0x12   :  { %55 = vrot.lane.b32.xlu0 %v109_v9, %s139_s7  ;;  %61 = vrot.lane.b32.xlu1 %v110_v10, %s140_s8 }
  0x16   :  { %67 = vrot.lane.b32.xlu0 %v111_v11, %s141_s13  ;;  %73 = vrot.lane.b32.xlu1 %v112_v12, %s142_s14 }
  0x1a   :  { %79 = vrot.lane.b32.xlu0 %v113_v13, %s143_s19  ;;  %85 = vrot.lane.b32.xlu1 %v114_v14, %s144_s20 }
  0x1e   :  { %91 = vrot.lane.b32.xlu0 %v115_v15, %s145_s0 }
  0x74   :  { %v8_v16 = vpop.permute.xlu0 %7   ;;  %v20_v17 = vpop.permute.xlu1 %19  }
  0x75   :  { %10 = vst.msk [vmem:[#allocation0] sm:$0x1] %vm9_vm1, %v8_v16  }
  0x78   :  { %v14_v18 = vpop.permute.xlu0 %13   ;;  %v26_v19 = vpop.permute.xlu1 %25  }
  0x79   :  { %16 = vst.msk [vmem:[#allocation0] sm:$0x1] %vm15_vm2, %v14_v18  }
  0x7a   :  { %22 = vst.msk [vmem:[#allocation0] sm:$0x1] %vm21_vm3, %v20_v17  }
  0x7b   :  { %28 = vst.msk [vmem:[#allocation0] sm:$0x1] %vm27_vm4, %v26_v19  }
  0x7c   :  { %v32_v20 = vpop.permute.xlu0 %31   ;;  %v38_v21 = vpop.permute.xlu1 %37  }
  0x7d   :  { %34 = vst.msk [vmem:[#allocation0] sm:$0x1] %vm33_vm5, %v32_v20  }
  0x7e   :  { %40 = vst.msk [vmem:[#allocation0] sm:$0x1] %vm39_vm6, %v38_v21  }
  0x80   :  { %v44_v22 = vpop.permute.xlu0 %43   ;;  %v50_v23 = vpop.permute.xlu1 %49  }
  0x81   :  { %46 = vst.msk [vmem:[#allocation0] sm:$0x1] %vm45_vm7, %v44_v22  }
  0x82   :  { %52 = vst.msk [vmem:[#allocation0] sm:$0x1] %vm51_vm8, %v50_v23  }
  0x84   :  { %v56_v24 = vpop.permute.xlu0 %55   ;;  %v62_v25 = vpop.permute.xlu1 %61  }
  0x85   :  { %58 = vst.msk [vmem:[#allocation0] sm:$0x1] %vm57_vm9, %v56_v24  }
  0x86   :  { %64 = vst.msk [vmem:[#allocation0] sm:$0x1] %vm63_vm10, %v62_v25  }
  0x88   :  { %v68_v26 = vpop.permute.xlu0 %67   ;;  %v74_v27 = vpop.permute.xlu1 %73  }
  0x89   :  { %70 = vst.msk [vmem:[#allocation0] sm:$0x1] %vm69_vm11, %v68_v26  }
  0x8a   :  { %76 = vst.msk [vmem:[#allocation0] sm:$0x1] %vm75_vm12, %v74_v27  }
  0x8c   :  { %v80_v28 = vpop.permute.xlu0 %79   ;;  %v86_v29 = vpop.permute.xlu1 %85  }
  0x8d   :  { %82 = vst.msk [vmem:[#allocation0] sm:$0x1] %vm81_vm13, %v80_v28  }
  0x8e   :  { %88 = vst.msk [vmem:[#allocation0] sm:$0x1] %vm87_vm14, %v86_v29  }
  0x90   :  { %v92_v30 = vpop.permute.xlu0 %91  }
  0x91   :  { %94 = vst.msk [vmem:[#allocation0] sm:$0x1] %vm93_vm15, %v92_v30  }
  0x98   :  { %v98_v31 = vld [vmem:[#allocation0] sm:$0x1] }
  0x99   :  { %100 = vst [vmem:[%s208_s1] sm:$0x1] %v98_v31 }

// kernel: encoder_forward.1
= control target key start
LH: loop header
LB: loop body
LE: loop exit
PB: predicated region body
PF: predicated region fallthrough
CT: control target
= control target key end

     0   :  { %vm700_vm0 = vmmov 0   ;;  %vm398_vm1 = vcmask 1043456   ;;  %vm394_vm2 = vcmask 31744   ;;  %s1112_s1 = inlined_call_operand.vmem [shape: f32[256,256], index: 1, kind: input, shape index: {}]   ;;  %s1113_s0 = inlined_call_operand.vmem [shape: f32[8,256], index: 0, kind: input, shape index: {}]   ;;  %s1114_s3 = inlined_call_operand.vmem [shape: f32[256,128], index: 3, kind: input, shape index: {}]   ;;  %s1115_s2 = inlined_call_operand.vmem [shape: f32[1,256], index: 2, kind: input, shape index: {}]   ;;  %s1116_s5 = inlined_call_operand.vmem [shape: f32[128,4], index: 5, kind: input, shape index: {}]   ;;  %s1117_s7 = inlined_call_operand.vmem [shape: f32[4,128], index: 7, kind: input, shape index: {}]   ;;  %s1118_s4 = inlined_call_operand.vmem [shape: f32[1,128], index: 4, kind: input, shape index: {}]   ;;  %s1119_s6 = inlined_call_operand.vmem [shape: f32[1,4], index: 6, kind: input, shape index: {}]   ;;  %s1120_s8 = inlined_call_operand.vmem [shape: f32[1,128], index: 8, kind: input, shape index: {}]   ;;  %s1121_s9 = inlined_call_operand.vmem [shape: f32[8,128], index: 9, kind: output, shape index: {}]  }
   0x1   :  { %v35_v0 = vld [vmem:[%s1112_s1 + $0x8] sm:$0xff]  ;;  %v37_v1 = vld [vmem:[%s1112_s1 + $0x18] sm:$0xff]  ;;  %v34_v2 = vld [vmem:[%s1112_s1] sm:$0xff] }
   0x2   :  { %v576_v3 = vpack.c.bf16 %v37_v1, %v35_v0  ;;  %v36_v4 = vld [vmem:[%s1112_s1 + $0x10] sm:$0xff]  ;;  %v39_v5 = vld [vmem:[%s1112_s1 + $0x28] sm:$0xff]  ;;  %v41_v6 = vld [vmem:[%s1112_s1 + $0x38] sm:$0xff] }
   0x3   :  { %v578_v7 = vpack.c.bf16 %v36_v4, %v34_v2  ;;  %v580_v8 = vpack.c.bf16 %v41_v6, %v39_v5  ;;  %v38_v9 = vld [vmem:[%s1112_s1 + $0x20] sm:$0xff]  ;;  %v40_v10 = vld [vmem:[%s1112_s1 + $0x30] sm:$0xff]  ;;  %v43_v11 = vld [vmem:[%s1112_s1 + $0x48] sm:$0xff] }
   0x4   :  { %577 = vmatprep.subr.bf16.mxu0 %v576_v3  ;;  %v45_v12 = vld [vmem:[%s1112_s1 + $0x58] sm:$0xff]  ;;  %v582_v13 = vpack.c.bf16 %v40_v10, %v38_v9  ;;  %v42_v15 = vld [vmem:[%s1112_s1 + $0x40] sm:$0xff]  ;;  %v44_v16 = vld [vmem:[%s1112_s1 + $0x50] sm:$0xff] }
   0x5   :  { %579 = vmatpush1.bf16.msra.mxu0 %v578_v7  ;;  %v584_v14 = vpack.c.bf16 %v45_v12, %v43_v11  ;;  %v47_v17 = vld [vmem:[%s1112_s1 + $0x68] sm:$0xff]  ;;  %v49_v18 = vld [vmem:[%s1112_s1 + $0x78] sm:$0xff]  ;;  %v586_v19 = vpack.c.bf16 %v44_v16, %v42_v15  ;;  %v46_v21 = vld [vmem:[%s1112_s1 + $0x60] sm:$0xff] }
   0x6   :  { %581 = vmatprep.subr.bf16.mxu0 %v580_v8  ;;  %v588_v20 = vpack.c.bf16 %v49_v18, %v47_v17  ;;  %v48_v22 = vld [vmem:[%s1112_s1 + $0x70] sm:$0xff]  ;;  %v51_v23 = vld [vmem:[%s1112_s1 + $0x88] sm:$0xff]  ;;  %v53_v24 = vld [vmem:[%s1112_s1 + $0x98] sm:$0xff] }
   0x7   :  { %v590_v25 = vpack.c.bf16 %v48_v22, %v46_v21  ;;  %v592_v26 = vpack.c.bf16 %v53_v24, %v51_v23  ;;  %v50_v27 = vld [vmem:[%s1112_s1 + $0x80] sm:$0xff]  ;;  %v52_v28 = vld [vmem:[%s1112_s1 + $0x90] sm:$0xff]  ;;  %v55_v29 = vld [vmem:[%s1112_s1 + $0xa8] sm:$0xff] }
   0x8   :  { %v57_v30 = vld [vmem:[%s1112_s1 + $0xb8] sm:$0xff]  ;;  %v594_v31 = vpack.c.bf16 %v52_v28, %v50_v27  ;;  %v54_v33 = vld [vmem:[%s1112_s1 + $0xa0] sm:$0xff]  ;;  %v56_v34 = vld [vmem:[%s1112_s1 + $0xb0] sm:$0xff] }
   0x9   :  { %583 = vmatpush1.bf16.msra.mxu0 %v582_v13  ;;  %v596_v32 = vpack.c.bf16 %v57_v30, %v55_v29  ;;  %v59_v35 = vld [vmem:[%s1112_s1 + $0xc8] sm:$0xff]  ;;  %v61_v36 = vld [vmem:[%s1112_s1 + $0xd8] sm:$0xff]  ;;  %v598_v37 = vpack.c.bf16 %v56_v34, %v54_v33  ;;  %v58_v38 = vld [vmem:[%s1112_s1 + $0xc0] sm:$0xff] }
   0xa   :  { %585 = vmatprep.subr.bf16.mxu0 %v584_v14  ;;  %v60_v39 = vld [vmem:[%s1112_s1 + $0xd0] sm:$0xff]  ;;  %v600_v40 = vpack.c.bf16 %v61_v36, %v59_v35  ;;  %v63_v41 = vld [vmem:[%s1112_s1 + $0xe8] sm:$0xff]  ;;  %v65_v42 = vld [vmem:[%s1112_s1 + $0xf8] sm:$0xff] }
   0xb   :  { %v33_v43 = vld [vmem:[%s1113_s0 + $0x8] sm:$0xff]  ;;  %v199_v44 = vld [vmem:[%s1114_s3 + $0x80] sm:$0xff]  ;;  %v201_v49 = vld [vmem:[%s1114_s3 + $0x90] sm:$0xff]  ;;  %v602_v51 = vpack.c.bf16 %v60_v39, %v58_v38  ;;  %v604_v57 = vpack.c.bf16 %v65_v42, %v63_v41 }
   0xc   :  { %174 = vmatprep.mubr.f32.mxu0 %v33_v43  ;;  %v200_v45 = vld [vmem:[%s1114_s3 + $0x88] sm:$0xff]  ;;  %v183_v46 = vld [vmem:[%s1114_s3] sm:$0xff]  ;;  %v202_v50 = vld [vmem:[%s1114_s3 + $0x98] sm:$0xff] }
   0xd   :  { %587 = vmatpush1.bf16.msra.mxu0 %v586_v19  ;;  %v640_v47 = vpack.c.bf16 %v200_v45, %v199_v44  ;;  %v184_v48 = vld [vmem:[%s1114_s3 + $0x8] sm:$0xff]  ;;  %v644_v53 = vpack.c.bf16 %v202_v50, %v201_v49  ;;  %v185_v54 = vld [vmem:[%s1114_s3 + $0x10] sm:$0xff]  ;;  %v186_v55 = vld [vmem:[%s1114_s3 + $0x18] sm:$0xff] }
   0xe   :  { %589 = vmatprep.subr.bf16.mxu0 %v588_v20  ;;  %v642_v52 = vpack.c.bf16 %v184_v48, %v183_v46  ;;  %v203_v56 = vld [vmem:[%s1114_s3 + $0xa0] sm:$0xff]  ;;  %v64_v59 = vld [vmem:[%s1112_s1 + $0xf0] sm:$0xff]  ;;  %v204_v60 = vld [vmem:[%s1114_s3 + $0xa8] sm:$0xff]  ;;  %v646_v63 = vpack.c.bf16 %v186_v55, %v185_v54 }
   0xf   :  { %v62_v58 = vld [vmem:[%s1112_s1 + $0xe0] sm:$0xff]  ;;  %641 = vmatprep.subr.bf16.mxu1 %v640_v47  ;;  %v67_v61 = vld [vmem:[%s1112_s1 + $0x108] sm:$0xff]  ;;  %v69_v62 = vld [vmem:[%s1112_s1 + $0x118] sm:$0xff]  ;;  %v648_v0 = vpack.c.bf16 %v204_v60, %v203_v56 }
  0x10   :  { %643 = vmatpush3.bf16.msra.mxu1 %v642_v52  ;;  %v187_v1 = vld [vmem:[%s1114_s3 + $0x20] sm:$0xff]  ;;  %v188_v2 = vld [vmem:[%s1114_s3 + $0x28] sm:$0xff]  ;;  %v606_v3 = vpack.c.bf16 %v64_v59, %v62_v58  ;;  %v205_v4 = vld [vmem:[%s1114_s3 + $0xb0] sm:$0xff]  ;;  %v608_v6 = vpack.c.bf16 %v69_v62, %v67_v61 }
  0x11   :  { %591 = vmatpush1.bf16.msra.mxu0 %v590_v25  ;;  %645 = vmatprep.subr.bf16.mxu1 %v644_v53  ;;  %v206_v5 = vld [vmem:[%s1114_s3 + $0xb8] sm:$0xff]  ;;  %v66_v7 = vld [vmem:[%s1112_s1 + $0x100] sm:$0xff]  ;;  %v68_v8 = vld [vmem:[%s1112_s1 + $0x110] sm:$0xff]  ;;  %v650_v11 = vpack.c.bf16 %v188_v2, %v187_v1 }
  0x12   :  { %593 = vmatprep.subr.bf16.mxu0 %v592_v26  ;;  %v71_v9 = vld [vmem:[%s1112_s1 + $0x128] sm:$0xff]  ;;  %v73_v10 = vld [vmem:[%s1112_s1 + $0x138] sm:$0xff]  ;;  %v652_v12 = vpack.c.bf16 %v206_v5, %v205_v4  ;;  %v189_v13 = vld [vmem:[%s1114_s3 + $0x30] sm:$0xff]  ;;  %v610_v15 = vpack.c.bf16 %v68_v8, %v66_v7 }
  0x13   :  { %v190_v14 = vld [vmem:[%s1114_s3 + $0x38] sm:$0xff]  ;;  %v207_v16 = vld [vmem:[%s1114_s3 + $0xc0] sm:$0xff]  ;;  %v208_v17 = vld [vmem:[%s1114_s3 + $0xc8] sm:$0xff]  ;;  %v612_v18 = vpack.c.bf16 %v73_v10, %v71_v9 }
  0x14   :  { %647 = vmatpush3.bf16.msra.mxu1 %v646_v63  ;;  %v70_v19 = vld [vmem:[%s1112_s1 + $0x120] sm:$0xff]  ;;  %v72_v20 = vld [vmem:[%s1112_s1 + $0x130] sm:$0xff]  ;;  %v75_v21 = vld [vmem:[%s1112_s1 + $0x148] sm:$0xff]  ;;  %v654_v23 = vpack.c.bf16 %v190_v14, %v189_v13  ;;  %v656_v24 = vpack.c.bf16 %v208_v17, %v207_v16 }
  0x15   :  { %595 = vmatpush1.bf16.msra.mxu0 %v594_v31  ;;  %649 = vmatprep.subr.bf16.mxu1 %v648_v0  ;;  %v77_v22 = vld [vmem:[%s1112_s1 + $0x158] sm:$0xff]  ;;  %v191_v25 = vld [vmem:[%s1114_s3 + $0x40] sm:$0xff]  ;;  %v192_v26 = vld [vmem:[%s1114_s3 + $0x48] sm:$0xff]  ;;  %v614_v27 = vpack.c.bf16 %v72_v20, %v70_v19  ;;  %v100_v19 = vlaneseq }
  0x16   :  { %597 = vmatprep.subr.bf16.mxu0 %v596_v32  ;;  %v209_v28 = vld [vmem:[%s1114_s3 + $0xd0] sm:$0xff]  ;;  %v210_v29 = vld [vmem:[%s1114_s3 + $0xd8] sm:$0xff]  ;;  %v616_v30 = vpack.c.bf16 %v77_v22, %v75_v21  ;;  %v74_v31 = vld [vmem:[%s1112_s1 + $0x140] sm:$0xff]  ;;  %v658_v35 = vpack.c.bf16 %v192_v26, %v191_v25 }
  0x17   :  { %v76_v32 = vld [vmem:[%s1112_s1 + $0x150] sm:$0xff]  ;;  %v79_v33 = vld [vmem:[%s1112_s1 + $0x168] sm:$0xff]  ;;  %v81_v34 = vld [vmem:[%s1112_s1 + $0x178] sm:$0xff]  ;;  %v660_v36 = vpack.c.bf16 %v210_v29, %v209_v28  ;;  %v101_v20 = vshrl.u32 %v100_v19, 7 }
  0x18   :  { %651 = vmatpush3.bf16.msra.mxu1 %v650_v11  ;;  %v194_v38 = vld [vmem:[%s1114_s3 + $0x58] sm:$0xff]  ;;  %v618_v39 = vpack.c.bf16 %v76_v32, %v74_v31  ;;  %v212_v41 = vld [vmem:[%s1114_s3 + $0xe8] sm:$0xff]  ;;  %v620_v42 = vpack.c.bf16 %v81_v34, %v79_v33  ;;  %v78_v43 = vld [vmem:[%s1112_s1 + $0x160] sm:$0xff] }
  0x19   :  { %599 = vmatpush1.bf16.msra.mxu0 %v598_v37  ;;  %653 = vmatprep.subr.bf16.mxu1 %v652_v12  ;;  %v193_v37 = vld [vmem:[%s1114_s3 + $0x50] sm:$0xff]  ;;  %v83_v45 = vld [vmem:[%s1112_s1 + $0x188] sm:$0xff]  ;;  %v85_v46 = vld [vmem:[%s1112_s1 + $0x198] sm:$0xff]  ;;  %v102_v21 = vsub.s32 0, %v101_v20 }
  0x1a   :  { %601 = vmatprep.subr.bf16.mxu0 %v600_v40  ;;  %v211_v40 = vld [vmem:[%s1114_s3 + $0xe0] sm:$0xff]  ;;  %v80_v44 = vld [vmem:[%s1112_s1 + $0x170] sm:$0xff]  ;;  %v662_v47 = vpack.c.bf16 %v194_v38, %v193_v37  ;;  %v624_v50 = vpack.c.bf16 %v85_v46, %v83_v45  ;;  %v87_v53 = vld [vmem:[%s1112_s1 + $0x1a8] sm:$0xff] }
  0x1b   :  { %v664_v48 = vpack.c.bf16 %v212_v41, %v211_v40  ;;  %v622_v49 = vpack.c.bf16 %v80_v44, %v78_v43  ;;  %v84_v52 = vld [vmem:[%s1112_s1 + $0x190] sm:$0xff]  ;;  %v89_v54 = vld [vmem:[%s1112_s1 + $0x1b8] sm:$0xff]  ;;  %v91_v59 = vld [vmem:[%s1112_s1 + $0x1c8] sm:$0xff] }
  0x1c   :  { %655 = vmatpush3.bf16.msra.mxu1 %v654_v23  ;;  %v628_v56 = vpack.c.bf16 %v89_v54, %v87_v53  ;;  %v88_v58 = vld [vmem:[%s1112_s1 + $0x1b0] sm:$0xff]  ;;  %v93_v60 = vld [vmem:[%s1112_s1 + $0x1d8] sm:$0xff]  ;;  %v90_v63 = vld [vmem:[%s1112_s1 + $0x1c0] sm:$0xff]  ;;  %v106_v23 = vsub.s32 1, %v101_v20 }
  0x1d   :  { %603 = vmatpush1.bf16.msra.mxu0 %v602_v51  ;;  %657 = vmatprep.subr.bf16.mxu1 %v656_v24  ;;  %v82_v51 = vld [vmem:[%s1112_s1 + $0x180] sm:$0xff]  ;;  %v632_v62 = vpack.c.bf16 %v93_v60, %v91_v59  ;;  %v92_v0 = vld [vmem:[%s1112_s1 + $0x1d0] sm:$0xff]  ;;  %v95_v1 = vld [vmem:[%s1112_s1 + $0x1e8] sm:$0xff] }
  0x1e   :  { %605 = vmatprep.subr.bf16.mxu0 %v604_v57  ;;  %v626_v55 = vpack.c.bf16 %v84_v52, %v82_v51  ;;  %v86_v57 = vld [vmem:[%s1112_s1 + $0x1a0] sm:$0xff]  ;;  %v97_v2 = vld [vmem:[%s1112_s1 + $0x1f8] sm:$0xff]  ;;  %v196_v10 = vld [vmem:[%s1114_s3 + $0x68] sm:$0xff] }
  0x1f   :  { %v630_v61 = vpack.c.bf16 %v88_v58, %v86_v57  ;;  %v636_v4 = vpack.c.bf16 %v97_v2, %v95_v1  ;;  %v94_v5 = vld [vmem:[%s1112_s1 + $0x1e0] sm:$0xff]  ;;  %v213_v12 = vld [vmem:[%s1114_s3 + $0xf0] sm:$0xff]  ;;  %v214_v13 = vld [vmem:[%s1114_s3 + $0xf8] sm:$0xff] }
  0x20   :  { %659 = vmatpush3.bf16.msra.mxu1 %v658_v35  ;;  %v32_v8 = vld [vmem:[%s1113_s0] sm:$0xff]  ;;  %v668_v14 = vpack.c.bf16 %v214_v13, %v213_v12  ;;  %v198_v16 = vld [vmem:[%s1114_s3 + $0x78] sm:$0xff]  ;;  %v295_v35 = vld [vmem:[%s1116_s5 + $0x10] sm:$0xff] }
  0x21   :  { %607 = vmatpush1.bf16.msra.mxu0 %v606_v3  ;;  %661 = vmatprep.subr.bf16.mxu1 %v660_v36  ;;  %v634_v3 = vpack.c.bf16 %v92_v0, %v90_v63  ;;  %v195_v9 = vld [vmem:[%s1114_s3 + $0x60] sm:$0xff]  ;;  %v296_v36 = vld [vmem:[%s1116_s5 + $0x18] sm:$0xff]  ;;  %v299_v41 = vld [vmem:[%s1116_s5 + $0x30] sm:$0xff] }
  0x22   :  { %609 = vmatprep.subr.bf16.mxu0 %v608_v6  ;;  %v96_v6 = vld [vmem:[%s1112_s1 + $0x1f0] sm:$0xff]  ;;  %v666_v11 = vpack.c.bf16 %v196_v10, %v195_v9  ;;  %v98_v22 = vld [vmem:[%s1115_s2] sm:$0x3]  ;;  %v676_v37 = vpack.c.bf16 %v296_v36, %v295_v35  ;;  %v302_v45 = vld [vmem:[%s1116_s5 + $0x48] sm:$0xff] }
  0x23   :  { %v638_v7 = vpack.c.bf16 %v96_v6, %v94_v5  ;;  %v103_v24 = vrot.slane %v98_v22, %v102_v21  ;;  %v107_v25 = vrot.slane %v98_v22, %v106_v23  ;;  %v293_v29 = vld [vmem:[%s1116_s5] sm:$0xff]  ;;  %v306_v51 = vld [vmem:[%s1116_s5 + $0x68] sm:$0xff]  ;;  %v307_v53 = vld [vmem:[%s1116_s5 + $0x70] sm:$0xff] }
  0x24   :  { %663 = vmatpush3.bf16.msra.mxu1 %v662_v47  ;;  %v297_v38 = vld [vmem:[%s1116_s5 + $0x20] sm:$0xff]  ;;  %v303_v47 = vld [vmem:[%s1116_s5 + $0x50] sm:$0xff]  ;;  %v308_v54 = vld [vmem:[%s1116_s5 + $0x78] sm:$0xff] }
  0x25   :  { %611 = vmatpush1.bf16.msra.mxu0 %v610_v15  ;;  %665 = vmatprep.subr.bf16.mxu1 %v664_v48  ;;  %v197_v15 = vld [vmem:[%s1114_s3 + $0x70] sm:$0xff]  ;;  %v301_v44 = vld [vmem:[%s1116_s5 + $0x40] sm:$0xff]  ;;  %v304_v48 = vld [vmem:[%s1116_s5 + $0x58] sm:$0xff] }
  0x26   :  { %613 = vmatprep.subr.bf16.mxu0 %v612_v18  ;;  %v670_v17 = vpack.c.bf16 %v198_v16, %v197_v15  ;;  %v699_v18 = vmov 0.0|0.0   ;;  %v685_v46 = vpack.c.bf16 %v302_v45, %v301_v44  ;;  %v386_v57 = vld [vmem:[%s1117_s7] sm:$0xf] }
  0x27   :  { %v477_v59 = vld [vmem:[%s1118_s4] ss:$0 sm:$0xff] }
  0x28   :  { %667 = vmatpush3.bf16.msra.mxu1 %v666_v11  ;;  %v478_v0 = vld [vmem:[%s1119_s6] ss:$0 sm:$0xff] }
  0x29   :  { %615 = vmatpush1.bf16.msra.mxu0 %v614_v27  ;;  %669 = vmatprep.subr.bf16.mxu1 %v668_v14 }
  0x2a   :  { %617 = vmatprep.subr.bf16.mxu0 %v616_v30  ;;  %v294_v30 = vld [vmem:[%s1116_s5 + $0x8] sm:$0xff] }
  0x2b   :  { %v673_v33 = vpack.c.bf16 %v294_v30, %v293_v29 }
  0x2c   :  { %671 = vmatpush3.bf16.msra.mxu1 %v670_v17 }
  0x2d   :  { %619 = vmatpush1.bf16.msra.mxu0 %v618_v39  ;;  %672 = vmatprep.subr.bf16.mxu1 %v699_v18  ;;  %v298_v39 = vld [vmem:[%s1116_s5 + $0x28] sm:$0xff] }
  0x2e   :  { %621 = vmatprep.subr.bf16.mxu0 %v620_v42  ;;  %v679_v40 = vpack.c.bf16 %v298_v39, %v297_v38  ;;  %v300_v42 = vld [vmem:[%s1116_s5 + $0x38] sm:$0xff] }
  0x2f   :  { %v682_v43 = vpack.c.bf16 %v300_v42, %v299_v41 }
  0x31   :  { %623 = vmatpush1.bf16.msra.mxu0 %v622_v49  ;;  %v688_v49 = vpack.c.bf16 %v304_v48, %v303_v47 }
  0x32   :  { %625 = vmatprep.subr.bf16.mxu0 %v624_v50  ;;  %v305_v50 = vld [vmem:[%s1116_s5 + $0x60] sm:$0xff] }
  0x33   :  { %v691_v52 = vpack.c.bf16 %v306_v51, %v305_v50 }
  0x35   :  { %627 = vmatpush1.bf16.msra.mxu0 %v626_v55  ;;  %v694_v55 = vpack.c.bf16 %v308_v54, %v307_v53 }
  0x36   :  { %629 = vmatprep.subr.bf16.mxu0 %v628_v56  ;;  %v701_v56 = vmov 0.0  }
  0x39   :  { %631 = vmatpush1.bf16.msra.mxu0 %v630_v61 }
  0x3a   :  { %633 = vmatprep.subr.bf16.mxu0 %v632_v62 }
  0x3d   :  { %635 = vmatpush1.bf16.msra.mxu0 %v634_v3 }
  0x3e   :  { %637 = vmatprep.subr.bf16.mxu0 %v636_v4  ;;  %v479_v4 = vld [vmem:[%s1120_s8] ss:$0 sm:$0xff] }
  0x41   :  { %639 = vmatpush1.bf16.msra.mxu0 %v638_v7 }
  0x42   :  { %571 = vmatprep.subr.mxu0 %v701_v56 }
  0x44   :  { %175 = vmatmul.mubr.f32.vlgmr.msra.gmra.mrb[0].mxu0 %v32_v8 }
  0x45   :  { %573 = vmatprep.mubr.msk.f32.mxu0 %vm700_vm0, %v701_v56  ;;  %572 = vmatpush3.msk.msra.mxu0 %vm398_vm1, %v386_v57 }
 0x117   :  { %v176_v26 = vpop.f32.mrb[0].mxu0 }
 0x118   :  { %v177_v27 = vadd.f32 %v176_v26, %v103_v24  ;;  %v178_v28 = vpop.f32.mrb[1].mxu0 }
 0x119   :  { %v179_v31 = vadd.f32 %v178_v28, %v107_v25 }
 0x11a   :  { %v181_v34 = vmax.f32 %v177_v27, 0.0 }
 0x11b   :  { %v182_v32 = vmax.f32 %v179_v31, 0.0 }
 0x11d   :  { %286 = vmatprep.mubr.f32.mxu1 %v182_v32 }
 0x11e   :  { %287 = vmatmul.mubr.f32.vlgmr.msra.gmra.mrb[0].mxu1 %v181_v34 }
 0x11f   :  { %674 = vmatpush3.bf16.msra.mxu1 %v673_v33  ;;  %568 = vmatprep.mubr.msk.f32.mxu1 %vm700_vm0, %v701_v56 }
 0x120   :  { %675 = vmatprep.subr.bf16.mxu1 %v699_v18 }
 0x123   :  { %677 = vmatpush3.bf16.msra.mxu1 %v676_v37 }
 0x124   :  { %678 = vmatprep.subr.bf16.mxu1 %v699_v18 }
 0x127   :  { %680 = vmatpush3.bf16.msra.mxu1 %v679_v40 }
 0x128   :  { %681 = vmatprep.subr.bf16.mxu1 %v699_v18 }
 0x12b   :  { %683 = vmatpush3.bf16.msra.mxu1 %v682_v43 }
 0x12c   :  { %684 = vmatprep.subr.bf16.mxu1 %v699_v18 }
 0x12f   :  { %686 = vmatpush3.bf16.msra.mxu1 %v685_v46 }
 0x130   :  { %687 = vmatprep.subr.bf16.mxu1 %v699_v18 }
 0x133   :  { %689 = vmatpush3.bf16.msra.mxu1 %v688_v49 }
 0x134   :  { %690 = vmatprep.subr.bf16.mxu1 %v699_v18 }
 0x137   :  { %692 = vmatpush3.bf16.msra.mxu1 %v691_v52 }
 0x138   :  { %693 = vmatprep.subr.bf16.mxu1 %v699_v18 }
 0x13b   :  { %695 = vmatpush3.bf16.msra.mxu1 %v694_v55 }
 0x1f1   :  { %v514_v58 = vpop.f32.mrb[0].mxu1 }
 0x1f2   :  { %v515_v60 = vpop.f32.mrb[1].mxu1 }
 0x1f3   :  { %v516_v61 = vadd.f32 %v515_v60, %v514_v58 }
 0x1f5   :  { %v289_v62 = vadd.f32 %v516_v61, %v477_v59 }
 0x1f7   :  { %v292_v63 = vmax.f32 %v289_v62, 0.0 }
 0x1f9   :  { %569 = vmatmul.mubr.f32.vlgmr.msra.gmra.mrb[2].mxu1 %v292_v63 }
 0x2cc   :  { %v382_v1 = vpop.f32.mrb[2].mxu1 }
 0x2cd   :  { %v383_v2 = vadd.f32 %v478_v0, %v382_v1  ;;  %v570_v3 = vpop.f32.mrb[3].mxu1 }
 0x2cf   :  { %574 = vmatmul.mubr.msk.f32.vlgmr.msra.gmra.mrb[2].mxu0 %vm394_vm2, %v383_v2 }
 0x3a2   :  { %v468_v5 = vpop.f32.mrb[2].mxu0 }
 0x3a3   :  { %v469_v6 = vadd.f32 %v479_v4, %v468_v5  ;;  %v575_v7 = vpop.f32.mrb[3].mxu0 }
 0x3a5   :  { %472 = vst [vmem:[%s1121_s9] sm:$0xff] %v469_v6 }

</bundles_post_ra>
